<compile_context>
chip_gen: v7x
topology: tpu7x:2x2x1
jax: 0.10.0
libtpu: 0.0.40
codegen_flags: <defaults>
</compile_context>

<pallas_src>
import functools

import jax
import jax.numpy as jnp
from jax.experimental import pallas as pl
from jax.experimental.pallas import tpu as pltpu


# ---------------------------------------------------------------------------
# Kernels (channels-first tiles: [C, TN], point axis on lanes).
# ---------------------------------------------------------------------------

def _interp_conv_kernel(x1_ref, x2_ref, p1_ref, p2_ref, w_ref, b_ref,
                        y_ref, st_ref, *, n_neighbors, idx_bits, fuse_argmin,
                        n_valid):
    """3-NN inverse-distance interpolation + skip-add + Conv1d(k=1) + BN stats."""
    x1 = x1_ref[...].astype(jnp.float32)              # [3, TN]  (N lane-dense)
    x2 = x2_ref[...].astype(jnp.float32)              # [S, 3]
    s = x2.shape[0]
    tn = x1.shape[1]

    # squared distances [S, TN]: three VPU broadcast FMAs, (a-b)^2 form
    d = jnp.zeros((s, tn), jnp.float32)
    for c in range(x2.shape[1]):                      # static unroll (3)
        diff = x2[:, c:c + 1] - x1[c:c + 1, :]        # [S,1] - [1,TN] -> [S,TN]
        d = d + diff * diff

    s_iota = jax.lax.broadcasted_iota(jnp.int32, (s, tn), 0)
    big = jnp.float32(3.0e38)
    wmat = jnp.zeros((s, tn), jnp.float32)
    if fuse_argmin:
        lo_mask = jnp.int32((1 << idx_bits) - 1)
        hi_mask = jnp.int32(-(1 << idx_bits))         # == ~lo_mask

    for _ in range(n_neighbors):                      # static unroll (<= 3)
        if fuse_argmin:
            # d >= 0, so its f32 bit pattern is order-preserving as int32; stash
            # the sublane index in the low mantissa bits so ONE cross-sublane
            # reduction gives both the min value and a lowest-index tie-break.
            key = (pltpu.bitcast(d, jnp.int32) & hi_mask) | s_iota
            kmin = jnp.min(key, axis=0, keepdims=True)            # [1, TN]
            amin = kmin & lo_mask
            dmin = pltpu.bitcast(kmin & hi_mask, jnp.float32)
        else:
            dmin = jnp.min(d, axis=0, keepdims=True)
            amin = jnp.min(jnp.where(d <= dmin, s_iota, s),
                           axis=0, keepdims=True)
        onehot = s_iota == amin
        recip = 1.0 / (dmin + 1e-8)                   # exact division (matches torch)
        wmat = wmat + jnp.where(onehot, recip, 0.0)
        d = jnp.where(onehot, big, d)                 # exclude the selected sample

    # normalize AFTER the contraction (mathematically identical, cheaper)
    rnorm = 1.0 / jnp.sum(wmat, axis=0, keepdims=True)            # [1, TN] exact
    interp = jnp.dot(p2_ref[...].astype(jnp.bfloat16),            # [D, S]  bf16
                     wmat.astype(jnp.bfloat16),                   # [S, TN] bf16
                     preferred_element_type=jnp.float32)          # MXU, f32 acc
    h = interp * rnorm + p1_ref[...].astype(jnp.float32)          # skip ADD (per spec)

    # Conv1d(kernel=1): bf16 x bf16 MXU matmul, f32 accumulate + f32 bias
    y = jnp.dot(w_ref[...], h.astype(jnp.bfloat16),
                preferred_element_type=jnp.float32) + b_ref[...]
    y_ref[...] = y.astype(y_ref.dtype)

    # per-tile BatchNorm partial statistics in natural [C, 2] layout
    ym = y
    if n_valid is not None:                           # mask padded columns
        col = pl.program_id(1) * tn + jax.lax.broadcasted_iota(
            jnp.int32, (1, tn), 1)
        ym = jnp.where(col < n_valid, y, 0.0)
    st_ref[:, 0:1] = jnp.sum(ym, axis=1, keepdims=True)
    st_ref[:, 1:2] = jnp.sum(ym * ym, axis=1, keepdims=True)


def _bn_relu_conv_kernel(x_ref, sc_ref, sh_ref, w_ref, b_ref, y_ref, st_ref,
                         *, n_valid):
    """Folded BatchNorm + ReLU of the previous layer, then the next Conv1d(k=1)."""
    x = x_ref[...].astype(jnp.float32)                            # [Cin, TN]
    h = jnp.maximum(x * sc_ref[...] + sh_ref[...], 0.0)
    y = jnp.dot(w_ref[...], h.astype(jnp.bfloat16),               # bf16 MXU
                preferred_element_type=jnp.float32) + b_ref[...]
    y_ref[...] = y.astype(y_ref.dtype)

    ym = y
    if n_valid is not None:
        tn = y.shape[1]
        col = pl.program_id(1) * tn + jax.lax.broadcasted_iota(
            jnp.int32, (1, tn), 1)
        ym = jnp.where(col < n_valid, y, 0.0)
    st_ref[:, 0:1] = jnp.sum(ym, axis=1, keepdims=True)
    st_ref[:, 1:2] = jnp.sum(ym * ym, axis=1, keepdims=True)


def _bn_relu_kernel(x_ref, sc_ref, sh_ref, y_ref):
    """Final folded BatchNorm + ReLU (elementwise, lane-dense store)."""
    x = x_ref[...].astype(jnp.float32)
    y_ref[...] = jnp.maximum(x * sc_ref[...] + sh_ref[...], 0.0).astype(y_ref.dtype)


# ---------------------------------------------------------------------------
# Wrapper.
# ---------------------------------------------------------------------------

def _vmem_capacity_bytes():
    try:
        return int(pltpu.get_tpu_info().vmem_capacity_bytes)
    except Exception:
        return 64 * 1024 * 1024          # conservative default (v7x per-core VMEM)


def _pick_tile(n, s, d, c_max, vmem_limit_bytes):
    """S/D/VMEM-aware N tile: largest lane-aligned tile whose in-kernel [S,TN]
    temporaries + double-buffered streamed blocks fit the budget."""
    per_col = (6 * s * 4                 # d / key / iota / onehot / wmat temporaries
               + 2 * 3 * 4               # xyz1 block (f32), double buffered
               + 2 * d * 4               # points1 block (f32), double buffered
               + 2 * (d + c_max) * 4     # per-layer streamed blocks (upper bound)
               + 2 * 2 * c_max)          # bf16 activation out block, double buffered
    resident = (3 * s * 4 + d * s * 4                    # xyz2_t, points2
                + 2 * (c_max * max(d, c_max) * 2 + c_max * 8))  # weights/bias/scale/shift
    budget = int(vmem_limit_bytes * 0.7) - resident
    cap = max(128, min(2048, (budget // per_col // 128) * 128))
    if n <= cap:
        return n, n                      # single full-extent block (always legal)
    tn = cap
    n_pad = ((n + tn - 1) // tn) * tn
    return tn, n_pad


def _bn_scale_shift(stats, gamma, beta, count, eps=1e-5):
    """Fold training-mode BatchNorm1d into per-channel scale/shift (tiny glue)."""
    s = jnp.sum(stats, axis=(0, 1))                   # [C, 2]: sum, sum of squares
    mean = s[:, 0] / count
    var = jnp.maximum(s[:, 1] / count - mean * mean, 0.0)   # biased variance
    scale = gamma * jax.lax.rsqrt(var + eps)
    shift = beta - mean * scale
    return scale[:, None], shift[:, None]             # [C, 1] f32 each


def pointnet_fp_forward(xyz1, xyz2, points1, points2, params):
    """PyTorch layout: xyz1 [B,3,N], xyz2 [B,3,S], points1 [B,D,N] (or None),
    points2 [B,D,S].  Returns [B, mlp[-1], N] float32 (training-mode BN)."""
    B, _, N = xyz1.shape
    S = xyz2.shape[2]
    D = points2.shape[1]
    if points1 is None:
        points1 = jnp.zeros((B, D, N), points2.dtype)

    vmem_limit = min(int(_vmem_capacity_bytes() * 0.75), 100 * 1024 * 1024)
    c_max = max(w.shape[0] for (w, _, _, _) in params)
    tn, n_pad = _pick_tile(N, S, D, max(c_max, D), vmem_limit)
    n_tiles = n_pad // tn
    grid = (B, n_tiles)
    n_valid = None if n_pad == N else N

    if n_pad != N:                                    # pad N; stats get masked
        pad = ((0, 0), (0, 0), (0, n_pad - N))
        xyz1 = jnp.pad(xyz1, pad)
        points1 = jnp.pad(points1, pad)

    # Only the tiny xyz2 tensor is transposed; everything N-sized stays in NCW.
    xyz2_t = jnp.transpose(xyz2, (0, 2, 1))           # [B, S, 3]

    cparams = pltpu.CompilerParams(
        dimension_semantics=("parallel", "parallel"),
        vmem_limit_bytes=vmem_limit)

    def tile_spec(c):                                 # [B, C, N_pad] streamed over (b,t)
        return pl.BlockSpec((None, c, tn), lambda b, t: (b, 0, t))

    def batch_spec(c1, c2):                           # [B, c1, c2] resident across t
        return pl.BlockSpec((None, c1, c2), lambda b, t: (b, 0, 0))

    def const_spec(shape):                            # weights/scales, resident
        nd = len(shape)
        return pl.BlockSpec(shape, lambda b, t, _nd=nd: (0,) * _nd)

    def stat_spec(c):                                 # per-tile BN partial stats
        return pl.BlockSpec((None, None, c, 2), lambda b, t: (b, t, 0, 0))

    count = float(B * N)                              # true point count (no padding)

    # ---- layer 0: interpolation + skip-add + Conv1d ----
    w0, b0, g0, be0 = params[0]
    c0 = w0.shape[0]
    kernel0 = functools.partial(
        _interp_conv_kernel,
        n_neighbors=min(3, S),
        idx_bits=max(1, (S - 1).bit_length()),
        fuse_argmin=(S > 1 and (S - 1).bit_length() <= 10),
        n_valid=n_valid)
    y, st = pl.pallas_call(
        kernel0,
        grid=grid,
        in_specs=[tile_spec(3), batch_spec(S, 3), tile_spec(D), batch_spec(D, S),
                  const_spec(w0.shape), const_spec(b0.shape)],
        out_specs=[tile_spec(c0), stat_spec(c0)],
        out_shape=[jax.ShapeDtypeStruct((B, c0, n_pad), jnp.bfloat16),
                   jax.ShapeDtypeStruct((B, n_tiles, c0, 2), jnp.float32)],
        compiler_params=cparams,
    )(xyz1, xyz2_t, points1, points2, w0.astype(jnp.bfloat16), b0)
    scale, shift = _bn_scale_shift(st, g0, be0, count)

    # ---- remaining layers: BN + ReLU + Conv1d ----
    for (w, b, g, be) in params[1:]:
        cin, cout = w.shape[1], w.shape[0]
        y, st = pl.pallas_call(
            functools.partial(_bn_relu_conv_kernel, n_valid=n_valid),
            grid=grid,
            in_specs=[tile_spec(cin), const_spec((cin, 1)), const_spec((cin, 1)),
                      const_spec(w.shape), const_spec(b.shape)],
            out_specs=[tile_spec(cout), stat_spec(cout)],
            out_shape=[jax.ShapeDtypeStruct((B, cout, n_pad), jnp.bfloat16),
                       jax.ShapeDtypeStruct((B, n_tiles, cout, 2), jnp.float32)],
            compiler_params=cparams,
        )(y, scale, shift, w.astype(jnp.bfloat16), b)
        scale, shift = _bn_scale_shift(st, g, be, count)

    # ---- final BN + ReLU ----
    c_last = params[-1][0].shape[0]
    out = pl.pallas_call(
        _bn_relu_kernel,
        grid=grid,
        in_specs=[tile_spec(c_last), const_spec((c_last, 1)),
                  const_spec((c_last, 1))],
        out_specs=tile_spec(c_last),
        out_shape=jax.ShapeDtypeStruct((B, c_last, n_pad), jnp.float32),
        compiler_params=cparams,
    )(y, scale, shift)
    if n_pad != N:
        out = out[:, :, :N]
    return out                                        # [B, mlp[-1], N], NCW layout


def init_params(key, in_channel, mlp):
    """Synthetic per-layer params:
    (conv_w [Cout,Cin], conv_b [Cout,1], bn_gamma [Cout], bn_beta [Cout])."""
    params = []
    last = in_channel
    for out_c in mlp:
        key, k1, k2, k3, k4 = jax.random.split(key, 5)
        w = 0.1 * jax.random.normal(k1, (out_c, last), jnp.float32)
        b = 0.1 * jax.random.normal(k2, (out_c, 1), jnp.float32)
        g = 1.0 + 0.1 * jax.random.normal(k3, (out_c,), jnp.float32)
        be = 0.1 * jax.random.normal(k4, (out_c,), jnp.float32)
        params.append((w, b, g, be))
        last = out_c
    return params


if __name__ == "__main__":
    key = jax.random.PRNGKey(0)
    B, N, S, D = 2, 64, 16, 8          # D == in_channel (points1/points2 channels)
    mlp = [16, 8]                      # two Conv1d + BN + ReLU layers
    key, k1, k2, k3, k4, kp = jax.random.split(key, 6)
    xyz1 = jax.random.normal(k1, (B, 3, N), jnp.float32)
    xyz2 = jax.random.normal(k2, (B, 3, S), jnp.float32)
    points1 = jax.random.normal(k3, (B, D, N), jnp.float32)
    points2 = jax.random.normal(k4, (B, D, S), jnp.float32)
    params = init_params(kp, D, mlp)

    fwd = jax.jit(pointnet_fp_forward)
    out = fwd(xyz1, xyz2, points1, points2, params)
    out = jax.block_until_ready(out)
    assert out.shape == (B, mlp[-1], N)
    assert bool(jnp.all(jnp.isfinite(out)))
    print("KERNEL_OK")
</pallas_src>

<mosaic_0001>
module attributes {stable_mosaic.version = 11 : i64} {
  func.func @_bn_relu_conv_kernel(%arg0: i32, %arg1: i32, %arg2: memref<1x16x64xbf16, #tpu.memory_space<vmem>>, %arg3: memref<16x1xf32, #tpu.memory_space<vmem>>, %arg4: memref<16x1xf32, #tpu.memory_space<vmem>>, %arg5: memref<8x16xbf16, #tpu.memory_space<vmem>>, %arg6: memref<8x1xf32, #tpu.memory_space<vmem>>, %arg7: memref<1x8x64xbf16, #tpu.memory_space<vmem>>, %arg8: memref<1x1x8x2xf32, #tpu.memory_space<vmem>>) attributes {dimension_semantics = [#tpu.dimension_semantics<parallel>, #tpu.dimension_semantics<parallel>], iteration_bounds = array<i64: 2, 1>, scalar_prefetch = 0 : i64, scratch_operands = 0 : i64, tpu.core_type = #tpu.core_type<tc>, window_params = [{transform_indices = @transform_0, window_bounds = array<i64: 1, 16, 64>}, {pipeline_mode = #tpu.pipeline_mode<synchronous>, transform_indices = @transform_1, window_bounds = array<i64: 16, 1>}, {pipeline_mode = #tpu.pipeline_mode<synchronous>, transform_indices = @transform_2, window_bounds = array<i64: 16, 1>}, {pipeline_mode = #tpu.pipeline_mode<synchronous>, transform_indices = @transform_3, window_bounds = array<i64: 8, 16>}, {pipeline_mode = #tpu.pipeline_mode<synchronous>, transform_indices = @transform_4, window_bounds = array<i64: 8, 1>}, {transform_indices = @transform_5, window_bounds = array<i64: 1, 8, 64>}, {transform_indices = @transform_6, window_bounds = array<i64: 1, 1, 8, 2>}]} {
    %c0 = arith.constant 0 : index
    %c0_0 = arith.constant 0 : index
    %c0_1 = arith.constant 0 : index
    %0 = vector.load %arg2[%c0, %c0_0, %c0_1] : memref<1x16x64xbf16, #tpu.memory_space<vmem>>, vector<1x16x64xbf16>
    %1 = vector.shape_cast %0 : vector<1x16x64xbf16> to vector<16x64xbf16>
    %2 = arith.extf %1 : vector<16x64xbf16> to vector<16x64xf32>
    %c0_2 = arith.constant 0 : index
    %c0_3 = arith.constant 0 : index
    %3 = vector.load %arg3[%c0_2, %c0_3] : memref<16x1xf32, #tpu.memory_space<vmem>>, vector<16x1xf32>
    %4 = vector.broadcast %3 : vector<16x1xf32> to vector<16x64xf32>
    %5 = arith.mulf %2, %4 : vector<16x64xf32>
    %c0_4 = arith.constant 0 : index
    %c0_5 = arith.constant 0 : index
    %6 = vector.load %arg4[%c0_4, %c0_5] : memref<16x1xf32, #tpu.memory_space<vmem>>, vector<16x1xf32>
    %7 = vector.broadcast %6 : vector<16x1xf32> to vector<16x64xf32>
    %8 = arith.addf %5, %7 : vector<16x64xf32>
    %cst = arith.constant 0.000000e+00 : f32
    %9 = vector.broadcast %cst : f32 to vector<16x64xf32>
    %10 = arith.maximumf %8, %9 : vector<16x64xf32>
    %c0_6 = arith.constant 0 : index
    %c0_7 = arith.constant 0 : index
    %11 = vector.load %arg5[%c0_6, %c0_7] : memref<8x16xbf16, #tpu.memory_space<vmem>>, vector<8x16xbf16>
    %12 = arith.truncf %10 : vector<16x64xf32> to vector<16x64xbf16>
    %cst_8 = arith.constant dense<0.000000e+00> : vector<8x64xf32>
    %13 = tpu.matmul %11, %12, %cst_8 {dimension_numbers = #tpu.dot_dimension_numbers<[1], [0], [0], [1], [0, 0, 1, 1], [], []>} : vector<8x16xbf16>, vector<16x64xbf16>, vector<8x64xf32> -> vector<8x64xf32>
    %c0_9 = arith.constant 0 : index
    %c0_10 = arith.constant 0 : index
    %14 = vector.load %arg6[%c0_9, %c0_10] : memref<8x1xf32, #tpu.memory_space<vmem>>, vector<8x1xf32>
    %15 = vector.broadcast %14 : vector<8x1xf32> to vector<8x64xf32>
    %16 = arith.addf %13, %15 : vector<8x64xf32>
    %17 = arith.truncf %16 : vector<8x64xf32> to vector<8x64xbf16>
    %c0_11 = arith.constant 0 : index
    %c0_12 = arith.constant 0 : index
    %c0_13 = arith.constant 0 : index
    %18 = vector.load %arg7[%c0_11, %c0_12, %c0_13] : memref<1x8x64xbf16, #tpu.memory_space<vmem>>, vector<1x8x64xbf16>
    %19 = vector.shape_cast %18 : vector<1x8x64xbf16> to vector<8x64xbf16>
    %20 = vector.shape_cast %17 : vector<8x64xbf16> to vector<1x8x64xbf16>
    tpu.vector_store %arg7[%c0_11, %c0_12, %c0_13], %20 {strides = array<i32>} : memref<1x8x64xbf16, #tpu.memory_space<vmem>>, vector<1x8x64xbf16>,
    %cst_14 = arith.constant dense<0.000000e+00> : vector<8xf32>
    %21 = vector.multi_reduction <add>, %16, %cst_14 [1] : vector<8x64xf32> to vector<8xf32>
    %22 = vector.shape_cast %21 : vector<8xf32> to vector<8x1xf32>
    %c0_15 = arith.constant 0 : index
    %c0_16 = arith.constant 0 : index
    %c0_17 = arith.constant 0 : index
    %c0_18 = arith.constant 0 : index
    %23 = vector.load %arg8[%c0_15, %c0_16, %c0_17, %c0_18] : memref<1x1x8x2xf32, #tpu.memory_space<vmem>>, vector<1x1x8x1xf32>
    %24 = vector.shape_cast %23 : vector<1x1x8x1xf32> to vector<8x1xf32>
    %25 = vector.shape_cast %22 : vector<8x1xf32> to vector<1x1x8x1xf32>
    tpu.vector_store %arg8[%c0_15, %c0_16, %c0_17, %c0_18], %25 {strides = array<i32>} : memref<1x1x8x2xf32, #tpu.memory_space<vmem>>, vector<1x1x8x1xf32>,
    %26 = arith.mulf %16, %16 : vector<8x64xf32>
    %cst_19 = arith.constant dense<0.000000e+00> : vector<8xf32>
    %27 = vector.multi_reduction <add>, %26, %cst_19 [1] : vector<8x64xf32> to vector<8xf32>
    %28 = vector.shape_cast %27 : vector<8xf32> to vector<8x1xf32>
    %c0_20 = arith.constant 0 : index
    %c0_21 = arith.constant 0 : index
    %c0_22 = arith.constant 0 : index
    %c1 = arith.constant 1 : index
    %29 = vector.load %arg8[%c0_20, %c0_21, %c0_22, %c1] : memref<1x1x8x2xf32, #tpu.memory_space<vmem>>, vector<1x1x8x1xf32>
    %30 = vector.shape_cast %29 : vector<1x1x8x1xf32> to vector<8x1xf32>
    %31 = vector.shape_cast %28 : vector<8x1xf32> to vector<1x1x8x1xf32>
    tpu.vector_store %arg8[%c0_20, %c0_21, %c0_22, %c1], %31 {strides = array<i32>} : memref<1x1x8x2xf32, #tpu.memory_space<vmem>>, vector<1x1x8x1xf32>,
    return
  }
  func.func @transform_0(%arg0: i32, %arg1: i32) -> (i32, i32, i32) {
    %c0_i32 = arith.constant 0 : i32
    %c0_i32_0 = arith.constant 0 : i32
    return %arg0, %c0_i32, %arg1 : i32, i32, i32
  }
  func.func @transform_1(%arg0: i32, %arg1: i32) -> (i32, i32) {
    %c0_i32 = arith.constant 0 : i32
    %c0_i32_0 = arith.constant 0 : i32
    %c0_i32_1 = arith.constant 0 : i32
    return %c0_i32, %c0_i32_0 : i32, i32
  }
  func.func @transform_2(%arg0: i32, %arg1: i32) -> (i32, i32) {
    %c0_i32 = arith.constant 0 : i32
    %c0_i32_0 = arith.constant 0 : i32
    %c0_i32_1 = arith.constant 0 : i32
    return %c0_i32, %c0_i32_0 : i32, i32
  }
  func.func @transform_3(%arg0: i32, %arg1: i32) -> (i32, i32) {
    %c0_i32 = arith.constant 0 : i32
    %c0_i32_0 = arith.constant 0 : i32
    %c0_i32_1 = arith.constant 0 : i32
    return %c0_i32, %c0_i32_0 : i32, i32
  }
  func.func @transform_4(%arg0: i32, %arg1: i32) -> (i32, i32) {
    %c0_i32 = arith.constant 0 : i32
    %c0_i32_0 = arith.constant 0 : i32
    %c0_i32_1 = arith.constant 0 : i32
    return %c0_i32, %c0_i32_0 : i32, i32
  }
  func.func @transform_5(%arg0: i32, %arg1: i32) -> (i32, i32, i32) {
    %c0_i32 = arith.constant 0 : i32
    %c0_i32_0 = arith.constant 0 : i32
    return %arg0, %c0_i32, %arg1 : i32, i32, i32
  }
  func.func @transform_6(%arg0: i32, %arg1: i32) -> (i32, i32, i32, i32) {
    %c0_i32 = arith.constant 0 : i32
    %c0_i32_0 = arith.constant 0 : i32
    %c0_i32_1 = arith.constant 0 : i32
    return %arg0, %arg1, %c0_i32, %c0_i32_0 : i32, i32, i32, i32
  }
}

module attributes {stable_mosaic.version = 11 : i64} {
  func.func @_interp_conv_kernel(%arg0: i32, %arg1: i32, %arg2: memref<1x3x64xf32, #tpu.memory_space<vmem>>, %arg3: memref<1x16x3xf32, #tpu.memory_space<vmem>>, %arg4: memref<1x8x64xf32, #tpu.memory_space<vmem>>, %arg5: memref<1x8x16xf32, #tpu.memory_space<vmem>>, %arg6: memref<16x8xbf16, #tpu.memory_space<vmem>>, %arg7: memref<16x1xf32, #tpu.memory_space<vmem>>, %arg8: memref<1x16x64xbf16, #tpu.memory_space<vmem>>, %arg9: memref<1x1x16x2xf32, #tpu.memory_space<vmem>>) attributes {dimension_semantics = [#tpu.dimension_semantics<parallel>, #tpu.dimension_semantics<parallel>], iteration_bounds = array<i64: 2, 1>, scalar_prefetch = 0 : i64, scratch_operands = 0 : i64, tpu.core_type = #tpu.core_type<tc>, window_params = [{transform_indices = @transform_0, window_bounds = array<i64: 1, 3, 64>}, {transform_indices = @transform_1, window_bounds = array<i64: 1, 16, 3>}, {transform_indices = @transform_2, window_bounds = array<i64: 1, 8, 64>}, {transform_indices = @transform_3, window_bounds = array<i64: 1, 8, 16>}, {pipeline_mode = #tpu.pipeline_mode<synchronous>, transform_indices = @transform_4, window_bounds = array<i64: 16, 8>}, {pipeline_mode = #tpu.pipeline_mode<synchronous>, transform_indices = @transform_5, window_bounds = array<i64: 16, 1>}, {transform_indices = @transform_6, window_bounds = array<i64: 1, 16, 64>}, {transform_indices = @transform_7, window_bounds = array<i64: 1, 1, 16, 2>}]} {
    %c0 = arith.constant 0 : index
    %c0_0 = arith.constant 0 : index
    %c0_1 = arith.constant 0 : index
    %0 = vector.load %arg2[%c0, %c0_0, %c0_1] : memref<1x3x64xf32, #tpu.memory_space<vmem>>, vector<1x3x64xf32>
    %1 = vector.shape_cast %0 : vector<1x3x64xf32> to vector<3x64xf32>
    %c0_2 = arith.constant 0 : index
    %c0_3 = arith.constant 0 : index
    %c0_4 = arith.constant 0 : index
    %2 = vector.load %arg3[%c0_2, %c0_3, %c0_4] : memref<1x16x3xf32, #tpu.memory_space<vmem>>, vector<1x16x3xf32>
    %3 = vector.shape_cast %2 : vector<1x16x3xf32> to vector<16x3xf32>
    %cst = arith.constant 0.000000e+00 : f32
    %4 = vector.broadcast %cst : f32 to vector<16x64xf32>
    %5 = vector.extract_strided_slice %3 {offsets = [0, 0], sizes = [16, 1], strides = [1, 1]} : vector<16x3xf32> to vector<16x1xf32>
    %6 = vector.extract_strided_slice %1 {offsets = [0, 0], sizes = [1, 64], strides = [1, 1]} : vector<3x64xf32> to vector<1x64xf32>
    %7 = vector.broadcast %5 : vector<16x1xf32> to vector<16x64xf32>
    %8 = vector.broadcast %6 : vector<1x64xf32> to vector<16x64xf32>
    %9 = arith.subf %7, %8 : vector<16x64xf32>
    %10 = arith.mulf %9, %9 : vector<16x64xf32>
    %11 = arith.addf %4, %10 : vector<16x64xf32>
    %12 = vector.extract_strided_slice %3 {offsets = [0, 1], sizes = [16, 1], strides = [1, 1]} : vector<16x3xf32> to vector<16x1xf32>
    %13 = vector.extract_strided_slice %1 {offsets = [1, 0], sizes = [1, 64], strides = [1, 1]} : vector<3x64xf32> to vector<1x64xf32>
    %14 = vector.broadcast %12 : vector<16x1xf32> to vector<16x64xf32>
    %15 = vector.broadcast %13 : vector<1x64xf32> to vector<16x64xf32>
    %16 = arith.subf %14, %15 : vector<16x64xf32>
    %17 = arith.mulf %16, %16 : vector<16x64xf32>
    %18 = arith.addf %11, %17 : vector<16x64xf32>
    %19 = vector.extract_strided_slice %3 {offsets = [0, 2], sizes = [16, 1], strides = [1, 1]} : vector<16x3xf32> to vector<16x1xf32>
    %20 = vector.extract_strided_slice %1 {offsets = [2, 0], sizes = [1, 64], strides = [1, 1]} : vector<3x64xf32> to vector<1x64xf32>
    %21 = vector.broadcast %19 : vector<16x1xf32> to vector<16x64xf32>
    %22 = vector.broadcast %20 : vector<1x64xf32> to vector<16x64xf32>
    %23 = arith.subf %21, %22 : vector<16x64xf32>
    %24 = arith.mulf %23, %23 : vector<16x64xf32>
    %25 = arith.addf %18, %24 : vector<16x64xf32>
    %26 = tpu.iota {dimensions = array<i32: 0>} : vector<16x64xi32>
    %cst_5 = arith.constant 0.000000e+00 : f32
    %27 = vector.broadcast %cst_5 : f32 to vector<16x64xf32>
    %28 = tpu.bitcast %25 : vector<16x64xf32> -> vector<16x64xi32>
    %c-16_i32 = arith.constant -16 : i32
    %29 = vector.broadcast %c-16_i32 : i32 to vector<16x64xi32>
    %30 = arith.andi %28, %29 : vector<16x64xi32>
    %31 = arith.ori %30, %26 : vector<16x64xi32>
    %cst_6 = arith.constant dense<2147483647> : vector<64xi32>
    %32 = vector.multi_reduction <minsi>, %31, %cst_6 [0] : vector<16x64xi32> to vector<64xi32>
    %33 = vector.shape_cast %32 : vector<64xi32> to vector<1x64xi32>
    %c15_i32 = arith.constant 15 : i32
    %34 = vector.broadcast %c15_i32 : i32 to vector<1x64xi32>
    %35 = arith.andi %33, %34 : vector<1x64xi32>
    %c-16_i32_7 = arith.constant -16 : i32
    %36 = vector.broadcast %c-16_i32_7 : i32 to vector<1x64xi32>
    %37 = arith.andi %33, %36 : vector<1x64xi32>
    %38 = tpu.bitcast %37 : vector<1x64xi32> -> vector<1x64xf32>
    %39 = vector.broadcast %35 : vector<1x64xi32> to vector<16x64xi32>
    %40 = arith.cmpi eq, %26, %39 : vector<16x64xi32>
    %cst_8 = arith.constant 9.99999993E-9 : f32
    %41 = vector.broadcast %cst_8 : f32 to vector<1x64xf32>
    %42 = arith.addf %38, %41 : vector<1x64xf32>
    %cst_9 = arith.constant 1.000000e+00 : f32
    %43 = vector.broadcast %cst_9 : f32 to vector<1x64xf32>
    %44 = arith.divf %43, %42 : vector<1x64xf32>
    %cst_10 = arith.constant 0.000000e+00 : f32
    %45 = vector.shape_cast %44 : vector<1x64xf32> to vector<1x64xf32>
    %46 = vector.broadcast %45 : vector<1x64xf32> to vector<16x64xf32>
    %47 = vector.broadcast %cst_10 : f32 to vector<16x64xf32>
    %48 = arith.select %40, %46, %47 : vector<16x64xi1>, vector<16x64xf32>
    %49 = arith.addf %27, %48 : vector<16x64xf32>
    %cst_11 = arith.constant 3.000000e+38 : f32
    %50 = vector.broadcast %cst_11 : f32 to vector<16x64xf32>
    %51 = arith.select %40, %50, %25 : vector<16x64xi1>, vector<16x64xf32>
    %52 = tpu.bitcast %51 : vector<16x64xf32> -> vector<16x64xi32>
    %c-16_i32_12 = arith.constant -16 : i32
    %53 = vector.broadcast %c-16_i32_12 : i32 to vector<16x64xi32>
    %54 = arith.andi %52, %53 : vector<16x64xi32>
    %55 = arith.ori %54, %26 : vector<16x64xi32>
    %cst_13 = arith.constant dense<2147483647> : vector<64xi32>
    %56 = vector.multi_reduction <minsi>, %55, %cst_13 [0] : vector<16x64xi32> to vector<64xi32>
    %57 = vector.shape_cast %56 : vector<64xi32> to vector<1x64xi32>
    %c15_i32_14 = arith.constant 15 : i32
    %58 = vector.broadcast %c15_i32_14 : i32 to vector<1x64xi32>
    %59 = arith.andi %57, %58 : vector<1x64xi32>
    %c-16_i32_15 = arith.constant -16 : i32
    %60 = vector.broadcast %c-16_i32_15 : i32 to vector<1x64xi32>
    %61 = arith.andi %57, %60 : vector<1x64xi32>
    %62 = tpu.bitcast %61 : vector<1x64xi32> -> vector<1x64xf32>
    %63 = vector.broadcast %59 : vector<1x64xi32> to vector<16x64xi32>
    %64 = arith.cmpi eq, %26, %63 : vector<16x64xi32>
    %cst_16 = arith.constant 9.99999993E-9 : f32
    %65 = vector.broadcast %cst_16 : f32 to vector<1x64xf32>
    %66 = arith.addf %62, %65 : vector<1x64xf32>
    %cst_17 = arith.constant 1.000000e+00 : f32
    %67 = vector.broadcast %cst_17 : f32 to vector<1x64xf32>
    %68 = arith.divf %67, %66 : vector<1x64xf32>
    %cst_18 = arith.constant 0.000000e+00 : f32
    %69 = vector.shape_cast %68 : vector<1x64xf32> to vector<1x64xf32>
    %70 = vector.broadcast %69 : vector<1x64xf32> to vector<16x64xf32>
    %71 = vector.broadcast %cst_18 : f32 to vector<16x64xf32>
    %72 = arith.select %64, %70, %71 : vector<16x64xi1>, vector<16x64xf32>
    %73 = arith.addf %49, %72 : vector<16x64xf32>
    %cst_19 = arith.constant 3.000000e+38 : f32
    %74 = vector.broadcast %cst_19 : f32 to vector<16x64xf32>
    %75 = arith.select %64, %74, %51 : vector<16x64xi1>, vector<16x64xf32>
    %76 = tpu.bitcast %75 : vector<16x64xf32> -> vector<16x64xi32>
    %c-16_i32_20 = arith.constant -16 : i32
    %77 = vector.broadcast %c-16_i32_20 : i32 to vector<16x64xi32>
    %78 = arith.andi %76, %77 : vector<16x64xi32>
    %79 = arith.ori %78, %26 : vector<16x64xi32>
    %cst_21 = arith.constant dense<2147483647> : vector<64xi32>
    %80 = vector.multi_reduction <minsi>, %79, %cst_21 [0] : vector<16x64xi32> to vector<64xi32>
    %81 = vector.shape_cast %80 : vector<64xi32> to vector<1x64xi32>
    %c15_i32_22 = arith.constant 15 : i32
    %82 = vector.broadcast %c15_i32_22 : i32 to vector<1x64xi32>
    %83 = arith.andi %81, %82 : vector<1x64xi32>
    %c-16_i32_23 = arith.constant -16 : i32
    %84 = vector.broadcast %c-16_i32_23 : i32 to vector<1x64xi32>
    %85 = arith.andi %81, %84 : vector<1x64xi32>
    %86 = tpu.bitcast %85 : vector<1x64xi32> -> vector<1x64xf32>
    %87 = vector.broadcast %83 : vector<1x64xi32> to vector<16x64xi32>
    %88 = arith.cmpi eq, %26, %87 : vector<16x64xi32>
    %cst_24 = arith.constant 9.99999993E-9 : f32
    %89 = vector.broadcast %cst_24 : f32 to vector<1x64xf32>
    %90 = arith.addf %86, %89 : vector<1x64xf32>
    %cst_25 = arith.constant 1.000000e+00 : f32
    %91 = vector.broadcast %cst_25 : f32 to vector<1x64xf32>
    %92 = arith.divf %91, %90 : vector<1x64xf32>
    %cst_26 = arith.constant 0.000000e+00 : f32
    %93 = vector.shape_cast %92 : vector<1x64xf32> to vector<1x64xf32>
    %94 = vector.broadcast %93 : vector<1x64xf32> to vector<16x64xf32>
    %95 = vector.broadcast %cst_26 : f32 to vector<16x64xf32>
    %96 = arith.select %88, %94, %95 : vector<16x64xi1>, vector<16x64xf32>
    %97 = arith.addf %73, %96 : vector<16x64xf32>
    %cst_27 = arith.constant dense<0.000000e+00> : vector<64xf32>
    %98 = vector.multi_reduction <add>, %97, %cst_27 [0] : vector<16x64xf32> to vector<64xf32>
    %99 = vector.shape_cast %98 : vector<64xf32> to vector<1x64xf32>
    %cst_28 = arith.constant 1.000000e+00 : f32
    %100 = vector.broadcast %cst_28 : f32 to vector<1x64xf32>
    %101 = arith.divf %100, %99 : vector<1x64xf32>
    %c0_29 = arith.constant 0 : index
    %c0_30 = arith.constant 0 : index
    %c0_31 = arith.constant 0 : index
    %102 = vector.load %arg5[%c0_29, %c0_30, %c0_31] : memref<1x8x16xf32, #tpu.memory_space<vmem>>, vector<1x8x16xf32>
    %103 = vector.shape_cast %102 : vector<1x8x16xf32> to vector<8x16xf32>
    %104 = arith.truncf %103 : vector<8x16xf32> to vector<8x16xbf16>
    %105 = arith.truncf %97 : vector<16x64xf32> to vector<16x64xbf16>
    %cst_32 = arith.constant dense<0.000000e+00> : vector<8x64xf32>
    %106 = tpu.matmul %104, %105, %cst_32 {dimension_numbers = #tpu.dot_dimension_numbers<[1], [0], [0], [1], [0, 0, 1, 1], [], []>} : vector<8x16xbf16>, vector<16x64xbf16>, vector<8x64xf32> -> vector<8x64xf32>
    %107 = vector.broadcast %101 : vector<1x64xf32> to vector<8x64xf32>
    %108 = arith.mulf %106, %107 : vector<8x64xf32>
    %c0_33 = arith.constant 0 : index
    %c0_34 = arith.constant 0 : index
    %c0_35 = arith.constant 0 : index
    %109 = vector.load %arg4[%c0_33, %c0_34, %c0_35] : memref<1x8x64xf32, #tpu.memory_space<vmem>>, vector<1x8x64xf32>
    %110 = vector.shape_cast %109 : vector<1x8x64xf32> to vector<8x64xf32>
    %111 = arith.addf %108, %110 : vector<8x64xf32>
    %c0_36 = arith.constant 0 : index
    %c0_37 = arith.constant 0 : index
    %112 = vector.load %arg6[%c0_36, %c0_37] : memref<16x8xbf16, #tpu.memory_space<vmem>>, vector<16x8xbf16>
    %113 = arith.truncf %111 : vector<8x64xf32> to vector<8x64xbf16>
    %cst_38 = arith.constant dense<0.000000e+00> : vector<16x64xf32>
    %114 = tpu.matmul %112, %113, %cst_38 {dimension_numbers = #tpu.dot_dimension_numbers<[1], [0], [0], [1], [0, 0, 1, 1], [], []>} : vector<16x8xbf16>, vector<8x64xbf16>, vector<16x64xf32> -> vector<16x64xf32>
    %c0_39 = arith.constant 0 : index
    %c0_40 = arith.constant 0 : index
    %115 = vector.load %arg7[%c0_39, %c0_40] : memref<16x1xf32, #tpu.memory_space<vmem>>, vector<16x1xf32>
    %116 = vector.broadcast %115 : vector<16x1xf32> to vector<16x64xf32>
    %117 = arith.addf %114, %116 : vector<16x64xf32>
    %118 = arith.truncf %117 : vector<16x64xf32> to vector<16x64xbf16>
    %c0_41 = arith.constant 0 : index
    %c0_42 = arith.constant 0 : index
    %c0_43 = arith.constant 0 : index
    %119 = vector.load %arg8[%c0_41, %c0_42, %c0_43] : memref<1x16x64xbf16, #tpu.memory_space<vmem>>, vector<1x16x64xbf16>
    %120 = vector.shape_cast %119 : vector<1x16x64xbf16> to vector<16x64xbf16>
    %121 = vector.shape_cast %118 : vector<16x64xbf16> to vector<1x16x64xbf16>
    tpu.vector_store %arg8[%c0_41, %c0_42, %c0_43], %121 {strides = array<i32>} : memref<1x16x64xbf16, #tpu.memory_space<vmem>>, vector<1x16x64xbf16>,
    %cst_44 = arith.constant dense<0.000000e+00> : vector<16xf32>
    %122 = vector.multi_reduction <add>, %117, %cst_44 [1] : vector<16x64xf32> to vector<16xf32>
    %123 = vector.shape_cast %122 : vector<16xf32> to vector<16x1xf32>
    %c0_45 = arith.constant 0 : index
    %c0_46 = arith.constant 0 : index
    %c0_47 = arith.constant 0 : index
    %c0_48 = arith.constant 0 : index
    %124 = vector.load %arg9[%c0_45, %c0_46, %c0_47, %c0_48] : memref<1x1x16x2xf32, #tpu.memory_space<vmem>>, vector<1x1x16x1xf32>
    %125 = vector.shape_cast %124 : vector<1x1x16x1xf32> to vector<16x1xf32>
    %126 = vector.shape_cast %123 : vector<16x1xf32> to vector<1x1x16x1xf32>
    tpu.vector_store %arg9[%c0_45, %c0_46, %c0_47, %c0_48], %126 {strides = array<i32>} : memref<1x1x16x2xf32, #tpu.memory_space<vmem>>, vector<1x1x16x1xf32>,
    %127 = arith.mulf %117, %117 : vector<16x64xf32>
    %cst_49 = arith.constant dense<0.000000e+00> : vector<16xf32>
    %128 = vector.multi_reduction <add>, %127, %cst_49 [1] : vector<16x64xf32> to vector<16xf32>
    %129 = vector.shape_cast %128 : vector<16xf32> to vector<16x1xf32>
    %c0_50 = arith.constant 0 : index
    %c0_51 = arith.constant 0 : index
    %c0_52 = arith.constant 0 : index
    %c1 = arith.constant 1 : index
    %130 = vector.load %arg9[%c0_50, %c0_51, %c0_52, %c1] : memref<1x1x16x2xf32, #tpu.memory_space<vmem>>, vector<1x1x16x1xf32>
    %131 = vector.shape_cast %130 : vector<1x1x16x1xf32> to vector<16x1xf32>
    %132 = vector.shape_cast %129 : vector<16x1xf32> to vector<1x1x16x1xf32>
    tpu.vector_store %arg9[%c0_50, %c0_51, %c0_52, %c1], %132 {strides = array<i32>} : memref<1x1x16x2xf32, #tpu.memory_space<vmem>>, vector<1x1x16x1xf32>,
    return
  }
  func.func @transform_0(%arg0: i32, %arg1: i32) -> (i32, i32, i32) {
    %c0_i32 = arith.constant 0 : i32
    %c0_i32_0 = arith.constant 0 : i32
    return %arg0, %c0_i32, %arg1 : i32, i32, i32
  }
  func.func @transform_1(%arg0: i32, %arg1: i32) -> (i32, i32, i32) {
    %c0_i32 = arith.constant 0 : i32
    %c0_i32_0 = arith.constant 0 : i32
    %c0_i32_1 = arith.constant 0 : i32
    return %arg0, %c0_i32, %c0_i32_0 : i32, i32, i32
  }
  func.func @transform_2(%arg0: i32, %arg1: i32) -> (i32, i32, i32) {
    %c0_i32 = arith.constant 0 : i32
    %c0_i32_0 = arith.constant 0 : i32
    return %arg0, %c0_i32, %arg1 : i32, i32, i32
  }
  func.func @transform_3(%arg0: i32, %arg1: i32) -> (i32, i32, i32) {
    %c0_i32 = arith.constant 0 : i32
    %c0_i32_0 = arith.constant 0 : i32
    %c0_i32_1 = arith.constant 0 : i32
    return %arg0, %c0_i32, %c0_i32_0 : i32, i32, i32
  }
  func.func @transform_4(%arg0: i32, %arg1: i32) -> (i32, i32) {
    %c0_i32 = arith.constant 0 : i32
    %c0_i32_0 = arith.constant 0 : i32
    %c0_i32_1 = arith.constant 0 : i32
    return %c0_i32, %c0_i32_0 : i32, i32
  }
  func.func @transform_5(%arg0: i32, %arg1: i32) -> (i32, i32) {
    %c0_i32 = arith.constant 0 : i32
    %c0_i32_0 = arith.constant 0 : i32
    %c0_i32_1 = arith.constant 0 : i32
    return %c0_i32, %c0_i32_0 : i32, i32
  }
  func.func @transform_6(%arg0: i32, %arg1: i32) -> (i32, i32, i32) {
    %c0_i32 = arith.constant 0 : i32
    %c0_i32_0 = arith.constant 0 : i32
    return %arg0, %c0_i32, %arg1 : i32, i32, i32
  }
  func.func @transform_7(%arg0: i32, %arg1: i32) -> (i32, i32, i32, i32) {
    %c0_i32 = arith.constant 0 : i32
    %c0_i32_0 = arith.constant 0 : i32
    %c0_i32_1 = arith.constant 0 : i32
    return %arg0, %arg1, %c0_i32, %c0_i32_0 : i32, i32, i32, i32
  }
}

module attributes {stable_mosaic.version = 11 : i64} {
  func.func @_bn_relu_kernel(%arg0: i32, %arg1: i32, %arg2: memref<1x8x64xbf16, #tpu.memory_space<vmem>>, %arg3: memref<8x1xf32, #tpu.memory_space<vmem>>, %arg4: memref<8x1xf32, #tpu.memory_space<vmem>>, %arg5: memref<1x8x64xf32, #tpu.memory_space<vmem>>) attributes {dimension_semantics = [#tpu.dimension_semantics<parallel>, #tpu.dimension_semantics<parallel>], iteration_bounds = array<i64: 2, 1>, scalar_prefetch = 0 : i64, scratch_operands = 0 : i64, tpu.core_type = #tpu.core_type<tc>, window_params = [{transform_indices = @transform_0, window_bounds = array<i64: 1, 8, 64>}, {pipeline_mode = #tpu.pipeline_mode<synchronous>, transform_indices = @transform_1, window_bounds = array<i64: 8, 1>}, {pipeline_mode = #tpu.pipeline_mode<synchronous>, transform_indices = @transform_2, window_bounds = array<i64: 8, 1>}, {transform_indices = @transform_3, window_bounds = array<i64: 1, 8, 64>}]} {
    %c0 = arith.constant 0 : index
    %c0_0 = arith.constant 0 : index
    %c0_1 = arith.constant 0 : index
    %0 = vector.load %arg2[%c0, %c0_0, %c0_1] : memref<1x8x64xbf16, #tpu.memory_space<vmem>>, vector<1x8x64xbf16>
    %1 = vector.shape_cast %0 : vector<1x8x64xbf16> to vector<8x64xbf16>
    %2 = arith.extf %1 : vector<8x64xbf16> to vector<8x64xf32>
    %c0_2 = arith.constant 0 : index
    %c0_3 = arith.constant 0 : index
    %3 = vector.load %arg3[%c0_2, %c0_3] : memref<8x1xf32, #tpu.memory_space<vmem>>, vector<8x1xf32>
    %4 = vector.broadcast %3 : vector<8x1xf32> to vector<8x64xf32>
    %5 = arith.mulf %2, %4 : vector<8x64xf32>
    %c0_4 = arith.constant 0 : index
    %c0_5 = arith.constant 0 : index
    %6 = vector.load %arg4[%c0_4, %c0_5] : memref<8x1xf32, #tpu.memory_space<vmem>>, vector<8x1xf32>
    %7 = vector.broadcast %6 : vector<8x1xf32> to vector<8x64xf32>
    %8 = arith.addf %5, %7 : vector<8x64xf32>
    %cst = arith.constant 0.000000e+00 : f32
    %9 = vector.broadcast %cst : f32 to vector<8x64xf32>
    %10 = arith.maximumf %8, %9 : vector<8x64xf32>
    %c0_6 = arith.constant 0 : index
    %c0_7 = arith.constant 0 : index
    %c0_8 = arith.constant 0 : index
    %11 = vector.load %arg5[%c0_6, %c0_7, %c0_8] : memref<1x8x64xf32, #tpu.memory_space<vmem>>, vector<1x8x64xf32>
    %12 = vector.shape_cast %11 : vector<1x8x64xf32> to vector<8x64xf32>
    %13 = vector.shape_cast %10 : vector<8x64xf32> to vector<1x8x64xf32>
    tpu.vector_store %arg5[%c0_6, %c0_7, %c0_8], %13 {strides = array<i32>} : memref<1x8x64xf32, #tpu.memory_space<vmem>>, vector<1x8x64xf32>,
    return
  }
  func.func @transform_0(%arg0: i32, %arg1: i32) -> (i32, i32, i32) {
    %c0_i32 = arith.constant 0 : i32
    %c0_i32_0 = arith.constant 0 : i32
    return %arg0, %c0_i32, %arg1 : i32, i32, i32
  }
  func.func @transform_1(%arg0: i32, %arg1: i32) -> (i32, i32) {
    %c0_i32 = arith.constant 0 : i32
    %c0_i32_0 = arith.constant 0 : i32
    %c0_i32_1 = arith.constant 0 : i32
    return %c0_i32, %c0_i32_0 : i32, i32
  }
  func.func @transform_2(%arg0: i32, %arg1: i32) -> (i32, i32) {
    %c0_i32 = arith.constant 0 : i32
    %c0_i32_0 = arith.constant 0 : i32
    %c0_i32_1 = arith.constant 0 : i32
    return %c0_i32, %c0_i32_0 : i32, i32
  }
  func.func @transform_3(%arg0: i32, %arg1: i32) -> (i32, i32, i32) {
    %c0_i32 = arith.constant 0 : i32
    %c0_i32_0 = arith.constant 0 : i32
    return %arg0, %c0_i32, %arg1 : i32, i32, i32
  }
}

</mosaic_0001>

<bundles_post_ra>
// kernel: pointnet_fp_forward.5
= control target key start
LH: loop header
LB: loop body
LE: loop exit
PB: predicated region body
PF: predicated region fallthrough
CT: control target
= control target key end

     0   :  { %8 = vsyncpa [#allocation3], 0  ;;  %s584_s0 = inlined_call_operand.vmem [shape: bf16[2,8,64], index: 0, kind: input, shape index: {}]   ;;  %s585_s1 = inlined_call_operand.vmem [shape: f32[8,1], index: 1, kind: input, shape index: {}]   ;;  %s586_s2 = inlined_call_operand.vmem [shape: f32[8,1], index: 2, kind: input, shape index: {}]   ;;  %s587_s3 = inlined_call_operand.hbm [shape: f32[2,8,64], index: 3, kind: output, shape index: {}]  }
   0x1   :  { %10 = vsyncpa [#allocation3 + $0x1], 0  ;;  %s466_s12 = smov 0   ;;  %s468_s13 = smov 0  }
   0x2   :  { %s470_s14 = smov 0   ;;  %s472_s15 = smov 0  }
   0x3   :  { %s474_s16 = smov 0   ;;  %s476_s17 = smov 0  }
   0x4 LB: > { %s296_s18 = sadd.s32 4294967295, %s442_s17   ;;  %s297_s19 = sadd.s32 4294967294, %s442_s17   ;;  %s442_s17 = sphi %s476_s17, %s16_s17   ;;  %s438_s16 = sphi %s474_s16, %s594_s16   ;;  %s434_s15 = sphi %s472_s15, %s593_s15   ;;  %s430_s14 = sphi %s470_s14, %s592_s14   ;;  %s426_s13 = sphi %s468_s13, %s591_s13   ;;  %s422_s12 = sphi %s466_s12, %s590_s12  }
   0x5   : > { %s28_s20 = sadd.s32 1, %s438_s16  ;;  %s107_s21 = sadd.s32 1, %s430_s14 }
   0x6   : > { %p30_p0 = scmp.ge.s32.totalorder %s28_s20, 2  ;;  %p117_p1 = scmp.ne.s32.totalorder %s430_s14, %s426_s13 }
   0x7   : > { %p118_p2 = scmp.eq.s32.totalorder %s296_s18, 1  ;;  %p123_p3 = scmp.ne.s32.totalorder %s426_s13, %s422_s12 }
   0x8   : > { %s596_s20 = smov (%p30_p0, %s28_s20), 0  ;;  %p124_p5 = scmp.eq.s32.totalorder %s297_s19, 1 }
   0x9   : > { %p506_p4 = por %p118_p2, %p117_p1  ;;  %s102_s23 = ssub.s32 %s438_s16, %s596_s20 }
   0xa   : > { %p300_p6 = scmp.ge.s32.totalorder %s442_s17, 1  ;;  %p105_p7 = scmp.eq.s32.totalorder %s102_s23, 0 }
   0xb   : > { %p513_p8 = por %p124_p5, %p123_p3  ;;  %p158_p9 = scmp.lt.s32.totalorder %s442_s17, 3 }
   0xc   : > { %s519_s25 = scalar_select %p105_p7, %s430_s14, %s107_s21  }
   0xd   : > { %p159_p10 = pnand %p300_p6, %p158_p9 }
   0xe   : > { %v193_v0 = vld [vmem:[%s585_s1] sm:$0xff] (!%p159_p10)  ;;  %v444_v1 = vmov (!%p159_p10), 0   ;;  %p184_p11 = scmp.lt.s32.totalorder (!%p159_p10), %s434_s15, 1  ;;  %s181_s8 = sand.u32 (!%p159_p10), 1, %s426_s13   ;;  %vm208_vm0 = vcmask (!%p159_p10), 523264  }
   0xf   : > { %162 = sbr.rel (%p159_p10) target bundleno = 166 (0xa6), region = 32  ;;  %363 = vset.pattern.permute.xlu0 (!%p159_p10), %v444_v1  ;;  %v200_v2 = vld [vmem:[%s586_s2] sm:$0xff] (!%p159_p10)  ;;  %s301_s9 = sshll.u32 (!%p159_p10), %s181_s8, 3 }
  0x10   : > { %196 = vperm.xlu0 (!%p159_p10), %363, %v193_v0   ;;  %s304_s10 = sshll.u32 (!%p159_p10), %s434_s15, 7  ;;  %s183_s11 = scalar_lea.vmem (!%p159_p10), [#allocation2], %s301_s9 }
  0x11   : > { %s225_s18 = sshll.u32 (!%p159_p10), %s183_s11, 4  ;;  %s537_s23 = scalar_lea.hbm (!%p159_p10), %s587_s3, %s304_s10  ;;  %s539_s18 = int_to_ptr.vmem [resolvable:$true] %s225_s18 }
  0x12   : > { %s211_s26 = scalar_lea.sflag (!%p159_p10), [#allocation3], %s181_s8  ;;  %s364_s27 = scalar_lea.vmem (!%p159_p10), %s539_s18, 128 }
  0x13   : > { %p365_p12 = scmp.ne.s32.totalorder (!%p159_p10), %s539_s18, %s364_s27 }
  0x14   : > { %203 = vperm.xlu0 (!%p159_p10), %363, %v200_v2  }
  0x15   : > { %p366_p13 = pnand (!%p159_p10), %p365_p12, %p506_p4 }
  0x16   : > { %s185_s30 = scalar_select %p184_p11, %s434_s15, 1 }
  0x17   : > { %p367_p0 = pneg %p366_p13  ;;  %s445_s15 = smov [#allocation2]  }
  0x18   : > { %s302_s4 = sshll.u32 %s185_s30, 2  ;;  %s368_s28 = sshll.u32 %s445_s15, 4  ;;  %s369_s28 = int_to_ptr.vmem [resolvable:$false] %s368_s28 }
  0x19   : > { %s190_s7 = scalar_lea.vmem %s584_s0, %s302_s4  ;;  %s370_s29 = scalar_lea.vmem %s369_s28, 256 }
  0x1a   : > { %v191_v3 = vld [vmem:[%s190_s7] sm:$0xf]  ;;  %p371_p1 = scmp.lt.s32.totalorder %s539_s18, %s369_s28  ;;  %p372_p2 = scmp.lt.s32.totalorder %s370_s29, %s364_s27 }
  0x1b   : > { %v192_v4 = vunpack.c.l.bf16 %v191_v3 }
  0x1c   : > { %p373_p3 = por %p372_p2, %p371_p1 }
  0x1e   : > { %p374_p5 = pnand %p373_p3, %p367_p0 }
  0x8f   : > { %v197_v5 = vpop.permute.xlu0 %196 }
  0x90   : > { %v199_v6 = vmul.f32 %v197_v5, %v192_v4 }
  0x93   : > { %v204_v7 = vpop.permute.xlu0 %203 }
  0x94   : > { %v206_v8 = vadd.f32 %v204_v7, %v199_v6 }
  0x96   : > { %v207_v9 = vmax.f32 %v206_v8, 0.0 }
  0x98   : > { %209 = vst.msk [vmem:[%s183_s11] sm:$0xff] %vm208_vm0, %v207_v9 }
  0x99   : > { %377 = shalt.err (!%p374_p5)
}
  0x9a   : > { %s378_s30 = scalar_lea.hbm %s537_s23, 128  ;;  %s382_s6 = scalar_lea.hbm %s587_s3, 256 }
  0x9b   : > { %p379_p6 = scmp.ne.s32.totalorder %s537_s23, %s378_s30  ;;  %p383_p10 = scmp.lt.u32.totalorder %s537_s23, %s587_s3 }
  0x9c   : > { %p384_p11 = scmp.lt.u32.totalorder %s382_s6, %s378_s30  ;;  %p386_p13 = scmp.lt.u32.totalorder %s378_s30, %s537_s23 }
  0x9d   : > { %p380_p7 = pnand %p379_p6, %p506_p4 }
  0x9e   : > { %p385_p12 = por %p384_p11, %p383_p10 }
  0x9f   : > { %p381_p9 = pneg %p380_p7 }
  0xa0   : > { %p387_p0 = por %p386_p13, %p385_p12 }
  0xa2   : > { %p388_p1 = pnand %p387_p0, %p381_p9 }
  0xa4   : > { %391 = shalt.err (!%p388_p1)
}
  0xa5   : > { %307 = dma.vmem_to_hbm [thread:$0]  (%p506_p4), %s539_s18, 128, %s537_s23, %s211_s26  }
  0xa6 PF: > { %p313_p2 = scmp.ge.s32.totalorder %s442_s17, 2  ;;  %s237_s9 = sand.u32 1, %s422_s12  }
  0xa7   : > { %s238_s10 = scalar_lea.sflag [#allocation3], %s237_s9 }
  0xa8   : > { %p310_p3 = pnand %p313_p2, %p513_p8 }
  0xaa   : > { %417 = dma.done.wait (!%p310_p3), %s238_s10, 128  }
  0xab   : > { %419 = vsyncadd (!%p310_p3), %s238_s10, 4294967168  ;;  %s16_s17 = sadd.s32 1, %s442_s17   ;;  %s590_s12 = smov %s426_s13 }
  0xac   : > { %p13_p5 = scmp.ge.s32.totalorder %s16_s17, 4   ;;  %s591_s13 = smov %s430_s14 }
  0xad   : > { %s592_s14 = smov %s519_s25  ;;  %s593_s15 = smov %s438_s16 }
  0xae   : > { %s594_s16 = smov %s596_s20  ;;  %15 = sbr.rel (!%p13_p5) target bundleno = 4 (0x4), region = 67 }
  0xb5   :  { %243 = vsyncpa [#allocation3], 1 }
  0xb6   :  { %245 = vsyncpa [#allocation3 + $0x1], 1 }

// kernel: pointnet_fp_forward.4
= control target key start
LH: loop header
LB: loop body
LE: loop exit
PB: predicated region body
PF: predicated region fallthrough
CT: control target
= control target key end

     0   :  { %s636_s21 = smov 0   ;;  %s638_s22 = smov 0   ;;  %s698_s0 = inlined_call_operand.vmem [shape: bf16[2,16,64], index: 0, kind: input, shape index: {}]   ;;  %s699_s1 = inlined_call_operand.vmem [shape: f32[16,1], index: 1, kind: input, shape index: {}]   ;;  %s700_s2 = inlined_call_operand.vmem [shape: f32[16,1], index: 2, kind: input, shape index: {}]   ;;  %s701_s3 = inlined_call_operand.vmem [shape: bf16[8,16], index: 3, kind: input, shape index: {}]   ;;  %s702_s4 = inlined_call_operand.vmem [shape: f32[8,1], index: 4, kind: input, shape index: {}]   ;;  %s703_s5 = inlined_call_operand.vmem [shape: bf16[2,8,64], index: 5, kind: output, shape index: {0}]   ;;  %s704_s6 = inlined_call_operand.vmem [shape: f32[2,1,8,2], index: 6, kind: output, shape index: {1}]  }
   0x1   :  { %s640_s23 = smov 0  }
   0x2 LB: > { %s29_s24 = sadd.s32 1, %s592_s22  ;;  %p524_p0 = scmp.ge.s32.totalorder %s596_s23, 1  ;;  %s596_s23 = sphi %s640_s23, %s17_s23   ;;  %s592_s22 = sphi %s638_s22, %s706_s22   ;;  %s588_s21 = sphi %s636_s21, %s705_s21  }
   0x3   : > { %p31_p1 = scmp.ge.s32.totalorder %s29_s24, 2  ;;  %p236_p2 = scmp.lt.s32.totalorder %s596_s23, 3 }
   0x5   : > { %s708_s24 = smov (%p31_p1, %s29_s24), 0  ;;  %p237_p3 = pnand %p524_p0, %p236_p2 }
   0x6   : > { %v319_v0 = vld [vmem:[%s700_s2] sm:$0xff] (!%p237_p3)  ;;  %v598_v2 = vmov (!%p237_p3), 0   ;;  %v320_v3 = vld [vmem:[%s700_s2 + $0x8] sm:$0xff] (!%p237_p3)  ;;  %v599_v6 = vmov (!%p237_p3), 0.0   ;;  %vm600_vm0 = vmmov (!%p237_p3), 0   ;;  %p278_p4 = scmp.lt.s32.totalorder (!%p237_p3), %s588_s21, 1 }
   0x7   : > { %240 = sbr.rel (%p237_p3) target bundleno = 511 (0x1ff), region = 40  ;;  %v305_v1 = vld [vmem:[%s699_s1] sm:$0xff] (!%p237_p3)  ;;  %573 = vset.pattern.permute.xlu1 (!%p237_p3), %v598_v2  ;;  %572 = vset.pattern.permute.xlu0 (!%p237_p3), %v598_v2  ;;  %v306_v4 = vld [vmem:[%s699_s1 + $0x8] sm:$0xff] (!%p237_p3)  ;;  %vm343_vm1 = vcmask (!%p237_p3), 130048   ;;  %vm390_vm2 = vcmask (!%p237_p3), 523264   ;;  %vm388_vm3 = vcmask (!%p237_p3), 519168  }
   0x8   : > { %323 = vperm.xlu1 (!%p237_p3), %573, %v319_v0   ;;  %309 = vperm.xlu0 (!%p237_p3), %572, %v305_v1   ;;  %v337_v5 = vld [vmem:[%s702_s4] sm:$0xff] (!%p237_p3)  ;;  %vm394_vm4 = vcmask (!%p237_p3), 7168   ;;  %vm400_vm5 = vcmask (!%p237_p3), 15368  }
   0x9   : > { %539 = vmatprep.subr.bf16.mxu0 (!%p237_p3), %v599_v6  ;;  %541 = vmatprep.mubr.msk.bf16.mxu0 (!%p237_p3), %vm600_vm0, %v599_v6  ;;  %v335_v21 = vld [vmem:[%s701_s3] sm:$0xf] (!%p237_p3) }
   0xc   : > { %328 = vperm.xlu1 (!%p237_p3), %573, %v320_v3   ;;  %314 = vperm.xlu0 (!%p237_p3), %572, %v306_v4  }
   0xe   : > { %s710_s21 = smov (!%p278_p4, %s588_s21), 1 }
   0xf   : > { %s532_s11 = sshll.u32 %s710_s21, 3  ;;  %s527_s17 = sshll.u32 %s710_s21, 2 }
  0x10   : > { %340 = vperm.xlu0 %572, %v337_v5   ;;  %s285_s14 = scalar_lea.vmem %s698_s0, %s532_s11  ;;  %s292_s20 = scalar_lea.vmem %s703_s5, %s527_s17 }
  0x11   : > { %v534_v7 = vld [vmem:[%s285_s14] sm:$0xff]   ;;  %s299_s27 = scalar_lea.vmem %s704_s6, %s532_s11 }
  0x12   : > { %v535_v8 = vunpack.c.l.bf16 %v534_v7  ;;  %v536_v12 = vunpack.c.h.bf16 %v534_v7 }
  0x87   : > { %v324_v9 = vpop.permute.xlu1 %323  ;;  %v310_v10 = vpop.permute.xlu0 %309 }
  0x88   : > { %v317_v11 = vmul.f32 %v535_v8, %v310_v10 }
  0x8a   : > { %v331_v14 = vadd.f32 %v324_v9, %v317_v11 }
  0x8b   : > { %v315_v13 = vpop.permute.xlu0 %314  ;;  %v329_v16 = vpop.permute.xlu1 %328 }
  0x8c   : > { %v318_v15 = vmul.f32 %v536_v12, %v315_v13  ;;  %v333_v18 = vmax.f32 %v331_v14, 0.0 }
  0x8e   : > { %v332_v17 = vadd.f32 %v329_v16, %v318_v15 }
  0x8f   : > { %v341_v22 = vpop.permute.xlu0 %340 }
  0x90   : > { %v334_v19 = vmax.f32 %v332_v17, 0.0 }
  0x92   : > { %v336_v20 = vpack.c.bf16 %v334_v19, %v333_v18 }
  0x94   : > { %540 = vmatpush3.bf16.msra.mxu0 %v336_v20 }
  0x97   : > { %542 = vmatmul.mubr.msk.bf16.vlgmr.msra.gmra.mrb[0].mxu0 %vm343_vm1, %v335_v21 }
 0x16a   : > { %v381_v23 = vpop.f32.mrb[0].mxu0 }
 0x16b   : > { %v382_v24 = vadd.f32 %v381_v23, %v341_v22  ;;  %v543_v25 = vpop.f32.mrb[1].mxu0 }
 0x16c   : > { %v384_v26 = vpop.f32.mrb[2].mxu0 }
 0x16d   : > { %v387_v27 = vpack.c.bf16 %v382_v24, %v382_v24  ;;  %v544_v28 = vpop.f32.mrb[3].mxu0  ;;  %v391_v29 = vsel %vm390_vm2, %v382_v24, 0.0  ;;  %v396_v30 = vmul.f32 %v382_v24, %v382_v24 }
 0x16e   : > { %392 = vadd.xlane.f32.xlu1 %v391_v29 }
 0x16f   : > { %389 = vst.msk [vmem:[%s292_s20] sm:$0xf] %vm388_vm3, %v387_v27  ;;  %v397_v31 = vsel %vm390_vm2, %v396_v30, 0.0 }
 0x170   : > { %398 = vadd.xlane.f32.xlu0 %v397_v31 }
 0x1fb   : > { %v393_v32 = vpop.xlane.xlu1 %392 }
 0x1fc   : > { %395 = vst.msk [vmem:[%s299_s27] sm:$0xff] %vm394_vm4, %v393_v32 }
 0x1fd   : > { %v399_v33 = vpop.xlane.xlu0 %398 }
 0x1fe   : > { %401 = vst.msk [vmem:[%s299_s27] sm:$0xff] %vm400_vm5, %v399_v33 }
 0x1ff PF: > { %s17_s23 = sadd.s32 1, %s596_s23   ;;  %s705_s21 = smov %s592_s22 }
 0x200   : > { %p14_p5 = scmp.ge.s32.totalorder %s17_s23, 4   ;;  %s706_s22 = smov %s708_s24 }
 0x202   :  { %16 = sbr.rel (!%p14_p5) target bundleno = 2 (0x2), region = 82 }

// kernel: pointnet_fp_forward.3
= control target key start
LH: loop header
LB: loop body
LE: loop exit
PB: predicated region body
PF: predicated region fallthrough
CT: control target
= control target key end

     0   :  { %s1044_s24 = smov 0   ;;  %s1046_s25 = smov 0   ;;  %s1176_s0 = inlined_call_operand.vmem [shape: f32[2,3,64], index: 0, kind: input, shape index: {}]   ;;  %s1177_s1 = inlined_call_operand.vmem [shape: f32[2,16,3], index: 1, kind: input, shape index: {}]   ;;  %s1178_s2 = inlined_call_operand.vmem [shape: f32[2,8,64], index: 2, kind: input, shape index: {}]   ;;  %s1179_s3 = inlined_call_operand.vmem [shape: f32[2,8,16], index: 3, kind: input, shape index: {}]   ;;  %s1180_s4 = inlined_call_operand.vmem [shape: bf16[16,8], index: 4, kind: input, shape index: {}]   ;;  %s1181_s5 = inlined_call_operand.vmem [shape: f32[16,1], index: 5, kind: input, shape index: {}]   ;;  %s1182_s6 = inlined_call_operand.vmem [shape: bf16[2,16,64], index: 6, kind: output, shape index: {0}]   ;;  %s1183_s7 = inlined_call_operand.vmem [shape: f32[2,1,16,2], index: 7, kind: output, shape index: {1}]  }
   0x1   :  { %s1048_s26 = smov 0  }
   0x2 LB: > { %s30_s27 = sadd.s32 1, %s993_s25  ;;  %p893_p0 = scmp.ge.s32.totalorder %s997_s26, 1  ;;  %s997_s26 = sphi %s1048_s26, %s18_s26   ;;  %s993_s25 = sphi %s1046_s25, %s1193_s25   ;;  %s989_s24 = sphi %s1044_s24, %s1192_s24  }
   0x3   : > { %p32_p1 = scmp.ge.s32.totalorder %s30_s27, 2  ;;  %p293_p2 = scmp.lt.s32.totalorder %s997_s26, 3 }
   0x5   : > { %s1195_s27 = smov (%p32_p1, %s30_s27), 0  ;;  %p294_p3 = pnand %p893_p0, %p293_p2 }
   0x6   : > { %p355_p4 = scmp.lt.s32.totalorder (!%p294_p3), %s989_s24, 1  ;;  %v999_v0 = vmov (!%p294_p3), 1   ;;  %v1000_v1 = vmov (!%p294_p3), 0   ;;  %v1001_v4 = vmov (!%p294_p3), 2   ;;  %v1002_v5 = vmov (!%p294_p3), 0.0  }
   0x7   : > { %297 = sbr.rel (%p294_p3) target bundleno = 835 (0x343), region = 44  ;;  %961 = vset.pattern.permute.xlu1 (!%p294_p3), %v999_v0  ;;  %960 = vset.pattern.permute.xlu0 (!%p294_p3), %v1000_v1  ;;  %vm1003_vm0 = vmmov (!%p294_p3), 0   ;;  %v409_v6 = vlaneseq (!%p294_p3)  ;;  %vm464_vm1 = vcmask (!%p294_p3), 523264  }
   0x8   : > { %919 = vmatprep.subr.bf16.mxu0 (!%p294_p3), %v1002_v5  ;;  %925 = vmatprep.subr.bf16.mxu1 (!%p294_p3), %v1002_v5 }
   0x9   : > { %921 = vmatprep.mubr.msk.bf16.mxu0 (!%p294_p3), %vm1003_vm0, %v1002_v5  ;;  %927 = vmatprep.mubr.msk.bf16.mxu1 (!%p294_p3), %vm1003_vm0, %v1002_v5  ;;  %v1071_v7 = vshrl.u32 (!%p294_p3), %v409_v6, 7 }
   0xb   : > { %v429_v8 = vsub.s32 (!%p294_p3), 1, %v1071_v7  ;;  %v411_v9 = vsub.s32 (!%p294_p3), 0, %v1071_v7  ;;  %v447_v15 = vsub.s32 (!%p294_p3), 2, %v1071_v7  ;;  %v1080_v35 = vadd.s32 (!%p294_p3), 8, %v1071_v7 }
   0xe   : > { %s1197_s24 = smov (!%p355_p4, %s989_s24), 1 }
   0xf   : > { %s910_s28 = sshll.u32 %s1197_s24, 4  ;;  %s894_s9 = sshll.u32 %s1197_s24, 2 }
  0x10   : > { %s366_s8 = scalar_lea.vmem %s1177_s1, %s910_s28  ;;  %s361_s12 = scalar_lea.vmem %s1176_s0, %s894_s9 }
  0x11   : > { %v397_v2 = vld [vmem:[%s366_s8] sm:$0xff]  ;;  %v398_v3 = vld [vmem:[%s366_s8 + $0x8] sm:$0xff]  ;;  %s1123_s13 = sshll.u32 %s1197_s24, 3 }
  0x12   : > { %420 = vperm.xlu1 %961, %v397_v2   ;;  %401 = vperm.xlu0 %960, %v397_v2   ;;  %v396_v10 = vld [vmem:[%s361_s12] sm:$0x7]  ;;  %s377_s16 = scalar_lea.vmem %s1179_s3, %s1123_s13  ;;  %s373_s23 = scalar_lea.vmem %s1178_s2, %s1123_s13 }
  0x13   : > { %v430_v12 = vrot.slane %v396_v10, %v429_v8  ;;  %v412_v14 = vrot.slane %v396_v10, %v411_v9  ;;  %v448_v22 = vrot.slane %v396_v10, %v447_v15  ;;  %s385_s10 = scalar_lea.vmem %s1182_s6, %s1123_s13  ;;  %s394_s13 = scalar_lea.vmem %s1183_s7, %s910_s28 }
  0x16   : > { %424 = vperm.xlu1 %961, %v398_v3   ;;  %406 = vperm.xlu0 %960, %v398_v3  }
  0x1a   : > { %963 = vset.pattern.permute.xlu1 %v1001_v4  ;;  %962 = vset.pattern.permute.xlu0 %v1001_v4 }
  0x1b   : > { %442 = vperm.xlu1 %963, %v398_v3   ;;  %438 = vperm.xlu0 %962, %v397_v2  }
  0x1f   : > { %964 = vset.pattern.permute.xlu1 %v1000_v1  ;;  %965 = vset.pattern.permute.xlu0 %v1000_v1 }
  0x91   : > { %v421_v11 = vpop.permute.xlu1 %420  ;;  %v402_v13 = vpop.permute.xlu0 %401 }
  0x92   : > { %v431_v16 = vsub.f32 %v421_v11, %v430_v12  ;;  %v413_v17 = vsub.f32 %v402_v13, %v412_v14 }
  0x94   : > { %v433_v23 = vmul.f32 %v431_v16, %v431_v16  ;;  %v415_v24 = vmul.f32 %v413_v17, %v413_v17 }
  0x95   : > { %v425_v18 = vpop.permute.xlu1 %424  ;;  %v407_v19 = vpop.permute.xlu0 %406 }
  0x96   : > { %v432_v20 = vsub.f32 %v425_v18, %v430_v12  ;;  %v414_v21 = vsub.f32 %v407_v19, %v412_v14  ;;  %v435_v31 = vadd.f32 %v433_v23, %v415_v24 }
  0x98   : > { %v434_v25 = vmul.f32 %v432_v20, %v432_v20  ;;  %v416_v26 = vmul.f32 %v414_v21, %v414_v21 }
  0x9a   : > { %v443_v27 = vpop.permute.xlu1 %442  ;;  %v439_v28 = vpop.permute.xlu0 %438  ;;  %v436_v32 = vadd.f32 %v434_v25, %v416_v26 }
  0x9b   : > { %v450_v29 = vsub.f32 %v443_v27, %v448_v22  ;;  %v449_v30 = vsub.f32 %v439_v28, %v448_v22 }
  0x9d   : > { %v452_v33 = vmul.f32 %v450_v29, %v450_v29  ;;  %v451_v34 = vmul.f32 %v449_v30, %v449_v30 }
  0x9f   : > { %v454_v36 = vadd.f32 %v452_v33, %v436_v32  ;;  %v453_v37 = vadd.f32 %v451_v34, %v435_v31 }
  0xa1   : > { %v461_v38 = vand.u32 4294967280, %v454_v36  ;;  %v460_v39 = vand.u32 4294967280, %v453_v37 }
  0xa3   : > { %v463_v40 = vor.u32 %v461_v38, %v1080_v35  ;;  %v462_v41 = vor.u32 %v460_v39, %v1071_v7 }
  0xa5   : > { %v466_v42 = vsel %vm464_vm1, %v463_v40, 2147483647  ;;  %v465_v43 = vsel %vm464_vm1, %v462_v41, 2147483647 }
  0xa6   : > { %vm467_vm2 = vcmp.lt.s32.totalorder %v465_v43, %v466_v42 }
  0xa7   : > { %v468_v44 = vsel %vm467_vm2, %v465_v43, %v466_v42 }
  0xa8   : > { %v469_v45 = vrot.slane %v468_v44, 4 }
  0xaa   : > { %vm470_vm3 = vcmp.lt.s32.totalorder %v468_v44, %v469_v45 }
  0xab   : > { %v471_v46 = vsel %vm470_vm3, %v468_v44, %v469_v45  ;;  %v567_v45 = vld [vmem:[%s377_s16] sm:$0xff] }
  0xac   : > { %v472_v47 = vrot.slane %v471_v46, 2 }
  0xae   : > { %vm473_vm4 = vcmp.lt.s32.totalorder %v471_v46, %v472_v47 }
  0xaf   : > { %v474_v48 = vsel %vm473_vm4, %v471_v46, %v472_v47 }
  0xb0   : > { %v475_v49 = vrot.slane %v474_v48, 1 }
  0xb2   : > { %vm476_vm5 = vcmp.lt.s32.totalorder %v474_v48, %v475_v49 }
  0xb3   : > { %v477_v50 = vsel %vm476_vm5, %v474_v48, %v475_v49  ;;  %vm570_vm5 = vcmask 130048  }
  0xb4   : > { %v478_v51 = vand.u32 15, %v477_v50  ;;  %v479_v21 = vand.u32 4294967280, %v477_v50  ;;  %v568_v50 = vpack.c.bf16 %v567_v45, %v567_v45 }
  0xb6   : > { %vm1087_vm6 = vcmp.eq.s32.totalorder %v1071_v7, %v478_v51  ;;  %vm1092_vm7 = vcmp.eq.s32.totalorder %v1080_v35, %v478_v51  ;;  %v483_v25 = vadd.f32 1e-08, %v479_v21 }
  0xb7   : > { %v490_v54 = vsel %vm1087_vm6, 3e+38, %v453_v37  ;;  %v491_v55 = vsel %vm1092_vm7, 3e+38, %v454_v36 }
  0xb8   : > { %v494_v56 = vand.u32 4294967280, %v490_v54  ;;  %v495_v57 = vand.u32 4294967280, %v491_v55 }
  0xba   : > { %v496_v58 = vor.u32 %v494_v56, %v1071_v7  ;;  %v497_v59 = vor.u32 %v495_v57, %v1080_v35 }
  0xbc   : > { %v498_v60 = vsel %vm464_vm1, %v496_v58, 2147483647  ;;  %v499_v61 = vsel %vm464_vm1, %v497_v59, 2147483647  ;;  %v615_v59 = vld [vmem:[%s373_s23] sm:$0xff] }
  0xbd   : > { %vm500_vm8 = vcmp.lt.s32.totalorder %v498_v60, %v499_v61 }
  0xbe   : > { %v501_v62 = vsel %vm500_vm8, %v498_v60, %v499_v61  ;;  %vm694_vm8 = vcmask 519168  }
  0xbf   : > { %v502_v63 = vrot.slane %v501_v62, 4 }
  0xc1   : > { %vm503_vm9 = vcmp.lt.s32.totalorder %v501_v62, %v502_v63 }
  0xc2   : > { %v504_v0 = vsel %vm503_vm9, %v501_v62, %v502_v63  ;;  %vm703_vm9 = vcmask 7168  }
  0xc3   : > { %v505_v1 = vrot.slane %v504_v0, 2 }
  0xc5   : > { %vm506_vm10 = vcmp.lt.s32.totalorder %v504_v0, %v505_v1 }
  0xc6   : > { %v507_v2 = vsel %vm506_vm10, %v504_v0, %v505_v1  ;;  %vm714_vm10 = vcmask 15368  }
  0xc7   : > { %v508_v3 = vrot.slane %v507_v2, 1 }
  0xc9   : > { %vm509_vm11 = vcmp.lt.s32.totalorder %v507_v2, %v508_v3 }
  0xca   : > { %v510_v4 = vsel %vm509_vm11, %v507_v2, %v508_v3  ;;  %v966_v3 = vld [vmem:[%s1180_s4] sm:$0xff]  }
  0xcb   : > { %v511_v5 = vand.u32 15, %v510_v4  ;;  %v512_v19 = vand.u32 4294967280, %v510_v4 }
  0xcd   : > { %vm1105_vm12 = vcmp.eq.s32.totalorder %v1071_v7, %v511_v5  ;;  %vm1110_vm13 = vcmp.eq.s32.totalorder %v1080_v35, %v511_v5  ;;  %v516_v23 = vadd.f32 1e-08, %v512_v19 }
  0xce   : > { %v523_v9 = vsel %vm1105_vm12, 3e+38, %v490_v54  ;;  %v524_v10 = vsel %vm1110_vm13, 3e+38, %v491_v55 }
  0xcf   : > { %v527_v11 = vand.u32 4294967280, %v523_v9  ;;  %v528_v12 = vand.u32 4294967280, %v524_v10  ;;  %967 = vrcp.f32 %v516_v23 }
  0xd0   : > { %969 = vrcp.f32 %v483_v25 }
  0xd1   : > { %v529_v13 = vor.u32 %v527_v11, %v1071_v7  ;;  %v530_v14 = vor.u32 %v528_v12, %v1080_v35 }
  0xd3   : > { %v531_v15 = vsel %vm464_vm1, %v529_v13, 2147483647  ;;  %v532_v16 = vsel %vm464_vm1, %v530_v14, 2147483647 }
  0xd4   : > { %vm533_vm14 = vcmp.lt.s32.totalorder %v531_v15, %v532_v16 }
  0xd5   : > { %v534_v17 = vsel %vm533_vm14, %v531_v15, %v532_v16 }
  0xd6   : > { %v535_v18 = vrot.slane %v534_v17, 4 }
  0xd8   : > { %vm536_vm15 = vcmp.lt.s32.totalorder %v534_v17, %v535_v18 }
  0xd9   : > { %v537_v20 = vsel %vm536_vm15, %v534_v17, %v535_v18  ;;  %v968_v30 = vpop.eup %967 }
  0xda   : > { %v538_v22 = vrot.slane %v537_v20, 2  ;;  %v970_v31 = vpop.eup %969  ;;  %v519_v33 = vsel %vm1105_vm12, %v968_v30, 0.0  ;;  %v520_v34 = vsel %vm1110_vm13, %v968_v30, 0.0 }
  0xdb   : > { %v486_v36 = vsel %vm1087_vm6, %v970_v31, 0.0  ;;  %v487_v37 = vsel %vm1092_vm7, %v970_v31, 0.0  ;;  %vm641_vm6 = vcmask 1043456   ;;  %vm637_vm7 = vcmask 64512  }
  0xdc   : > { %vm539_vm0 = vcmp.lt.s32.totalorder %v537_v20, %v538_v22  ;;  %v521_v39 = vadd.f32 %v519_v33, %v486_v36  ;;  %v522_v40 = vadd.f32 %v520_v34, %v487_v37 }
  0xdd   : > { %v540_v24 = vsel %vm539_vm0, %v537_v20, %v538_v22 }
  0xde   : > { %v541_v26 = vrot.slane %v540_v24, 1 }
  0xe0   : > { %vm542_vm2 = vcmp.lt.s32.totalorder %v540_v24, %v541_v26 }
  0xe1   : > { %v543_v27 = vsel %vm542_vm2, %v540_v24, %v541_v26 }
  0xe2   : > { %v545_v28 = vand.u32 4294967280, %v543_v27  ;;  %v544_v32 = vand.u32 15, %v543_v27 }
  0xe4   : > { %v549_v29 = vadd.f32 1e-08, %v545_v28  ;;  %vm547_vm3 = vcmp.eq.s32.totalorder %v1071_v7, %v544_v32  ;;  %vm548_vm4 = vcmp.eq.s32.totalorder %v1080_v35, %v544_v32  ;;  %v620_v7 = vld [vmem:[%s1181_s5] sm:$0xff]  ;;  %v621_v35 = vld [vmem:[%s1181_s5 + $0x8] sm:$0xff] }
  0xe5   : > { %624 = vperm.xlu1 %964, %v620_v7   ;;  %629 = vperm.xlu0 %965, %v621_v35  }
  0xe6   : > { %971 = vrcp.f32 %v549_v29 }
  0xf0   : > { %v972_v38 = vpop.eup %971 }
  0xf1   : > { %v552_v41 = vsel %vm547_vm3, %v972_v38, 0.0  ;;  %v553_v42 = vsel %vm548_vm4, %v972_v38, 0.0 }
  0xf2   : > { %v554_v43 = vadd.f32 %v552_v41, %v521_v39  ;;  %v555_v44 = vadd.f32 %v553_v42, %v522_v40 }
  0xf4   : > { %v556_v46 = vsel %vm464_vm1, %v554_v43, 0.0  ;;  %v557_v47 = vsel %vm464_vm1, %v555_v44, 0.0  ;;  %v569_v48 = vpack.c.bf16 %v555_v44, %v554_v43 }
  0xf5   : > { %v558_v49 = vadd.f32 %v557_v47, %v556_v46 }
  0xf6   : > { %920 = vmatpush3.bf16.msra.mxu0 %v569_v48 }
  0xf7   : > { %v559_v51 = vrot.slane %v558_v49, 4 }
  0xf9   : > { %922 = vmatmul.mubr.msk.bf16.vlgmr.msra.gmra.mrb[0].mxu0 %vm570_vm5, %v568_v50  ;;  %v560_v52 = vadd.f32 %v559_v51, %v558_v49 }
  0xfb   : > { %v561_v53 = vrot.slane %v560_v52, 2 }
  0xfd   : > { %v562_v54 = vadd.f32 %v561_v53, %v560_v52 }
  0xff   : > { %v563_v55 = vrot.slane %v562_v54, 1 }
 0x101   : > { %v564_v56 = vadd.f32 %v563_v55, %v562_v54 }
 0x103   : > { %973 = vrcp.f32 %v564_v56 }
 0x10d   : > { %v974_v57 = vpop.eup %973 }
 0x164   : > { %v625_v4 = vpop.permute.xlu1 %624  ;;  %v630_v6 = vpop.permute.xlu0 %629 }
 0x1cc   : > { %v608_v58 = vpop.f32.mrb[0].mxu0 }
 0x1cd   : > { %v614_v60 = vmul.f32 %v974_v57, %v608_v58  ;;  %v923_v61 = vpop.f32.mrb[1].mxu0 }
 0x1ce   : > { %v611_v62 = vpop.f32.mrb[2].mxu0 }
 0x1cf   : > { %v616_v63 = vadd.f32 %v615_v59, %v614_v60  ;;  %v924_v0 = vpop.f32.mrb[3].mxu0 }
 0x1d1   : > { %v619_v1 = vpack.c.bf16 %v616_v63, %v616_v63 }
 0x1d3   : > { %v643_v2 = vsel %vm641_vm6, %v619_v1, 0 }
 0x1d4   : > { %926 = vmatpush3.bf16.msra.mxu1 %v643_v2 }
 0x1d7   : > { %928 = vmatmul.mubr.msk.bf16.vlgmr.msra.gmra.mrb[0].mxu1 %vm637_vm7, %v966_v3 }
 0x2aa   : > { %v679_v5 = vpop.f32.mrb[0].mxu1 }
 0x2ab   : > { %v680_v8 = vadd.f32 %v679_v5, %v625_v4  ;;  %v929_v9 = vpop.f32.mrb[1].mxu1 }
 0x2ac   : > { %v682_v10 = vpop.f32.mrb[2].mxu1 }
 0x2ad   : > { %v913_v11 = vpack.c.bf16 %v680_v8, %v680_v8  ;;  %v683_v12 = vadd.f32 %v682_v10, %v630_v6  ;;  %v930_v13 = vpop.f32.mrb[3].mxu1  ;;  %v697_v14 = vsel %vm464_vm1, %v680_v8, 0.0  ;;  %v706_v15 = vmul.f32 %v680_v8, %v680_v8 }
 0x2ae   : > { %698 = vadd.xlane.f32.xlu1 %v697_v14 }
 0x2af   : > { %695 = vst.msk [vmem:[%s385_s10] sm:$0xf] %vm694_vm8, %v913_v11  ;;  %v914_v16 = vpack.c.bf16 %v683_v12, %v683_v12  ;;  %v700_v17 = vsel %vm464_vm1, %v683_v12, 0.0  ;;  %v707_v18 = vmul.f32 %v683_v12, %v683_v12  ;;  %v708_v19 = vsel %vm464_vm1, %v706_v15, 0.0 }
 0x2b0   : > { %701 = vadd.xlane.f32.xlu0 %v700_v17 }
 0x2b1   : > { %696 = vst.msk [vmem:[%s385_s10 + $0x4] sm:$0xf] %vm694_vm8, %v914_v16  ;;  %v711_v20 = vsel %vm464_vm1, %v707_v18, 0.0 }
 0x2b2   : > { %709 = vadd.xlane.f32.xlu1 %v708_v19 }
 0x2b4   : > { %712 = vadd.xlane.f32.xlu0 %v711_v20 }
 0x33b   : > { %v699_v21 = vpop.xlane.xlu1 %698 }
 0x33c   : > { %704 = vst.msk [vmem:[%s394_s13] sm:$0xff] %vm703_vm9, %v699_v21 }
 0x33d   : > { %v702_v22 = vpop.xlane.xlu0 %701 }
 0x33e   : > { %705 = vst.msk [vmem:[%s394_s13 + $0x8] sm:$0xff] %vm703_vm9, %v702_v22 }
 0x33f   : > { %v710_v23 = vpop.xlane.xlu1 %709 }
 0x340   : > { %715 = vst.msk [vmem:[%s394_s13] sm:$0xff] %vm714_vm10, %v710_v23 }
 0x341   : > { %v713_v24 = vpop.xlane.xlu0 %712 }
 0x342   : > { %716 = vst.msk [vmem:[%s394_s13 + $0x8] sm:$0xff] %vm714_vm10, %v713_v24 }
 0x343 PF: > { %s18_s26 = sadd.s32 1, %s997_s26   ;;  %s1192_s24 = smov %s993_s25 }
 0x344   : > { %p15_p5 = scmp.ge.s32.totalorder %s18_s26, 4   ;;  %s1193_s25 = smov %s1195_s27 }
 0x346   :  { %17 = sbr.rel (!%p15_p5) target bundleno = 2 (0x2), region = 95 }

</bundles_post_ra>
